<compile_context>
chip_gen: v5e
topology: v5e:2x2
jax: 0.10.0
libtpu: 0.0.40
codegen_flags: <defaults>
</compile_context>

<pallas_src>
import jax
import jax.numpy as jnp
from jax.experimental import pallas as pl
from jax.experimental.pallas import tpu as pltpu

# PyTorch spec dims
IN_FEATURES = 784
HIDDEN = 256
OUT_FEATURES = 5

# TPU-friendly padded dims
K_PAD = 896        # 7 * 128 : padded feature dim (zero-pad x cols / W1 rows)
OUT_PAD = 128      # lane-dense padded logits dim (zero-pad W3 cols / b3)
TILE_B_MAX = 256   # batch tile: multiple of 256 fills v6e/v7x MXU rows


def mlp_kernel(x_ref, w1_ref, b1_ref, w2_ref, b2_ref, w3_ref, b3_ref, o_ref):
    # Layer 1: (Tb, 896) bf16 @ (896, 256) bf16 -> f32 accumulate on MXU
    h1 = jnp.dot(x_ref[...], w1_ref[...], preferred_element_type=jnp.float32)
    # bias add + ReLU on the native f32 VPU path (v5e has no bf16 VALU);
    # downcast to bf16 only as the next matmul's operand.
    h1 = jnp.maximum(h1 + b1_ref[...], 0.0).astype(jnp.bfloat16)
    # Layer 2: (Tb, 256) @ (256, 256)
    h2 = jnp.dot(h1, w2_ref[...], preferred_element_type=jnp.float32)
    h2 = jnp.maximum(h2 + b2_ref[...], 0.0).astype(jnp.bfloat16)
    # Layer 3: (Tb, 256) @ (256, 128) -> lane-dense (Tb, 128) f32 store
    o_ref[...] = (
        jnp.dot(h2, w3_ref[...], preferred_element_type=jnp.float32) + b3_ref[...]
    ).astype(o_ref.dtype)


def _round_up(n, m):
    return (n + m - 1) // m * m


def mlp_forward(x, params):
    """x: (B, C, H, W) float32 NCHW, flattened like nn.Flatten. Returns (B, 5) f32."""
    w1, b1, w2, b2, w3, b3 = params
    B = x.shape[0]
    x2d = x.reshape(B, -1)  # (B, 784), row-major == nn.Flatten

    # Batch tile: full 256-row MXU tiles for big batches, 16-multiple (bf16
    # sublane pack) for small ones. Zero-pad the batch to a tile multiple.
    tile_b = TILE_B_MAX if B >= TILE_B_MAX else max(16, _round_up(B, 16))
    b_pad = _round_up(B, tile_b)

    # Zero padding is mathematically exact for the matmuls.
    x_p = jnp.zeros((b_pad, K_PAD), jnp.bfloat16)
    x_p = x_p.at[:B, :IN_FEATURES].set(x2d.astype(jnp.bfloat16))

    w1_p = jnp.zeros((K_PAD, HIDDEN), jnp.bfloat16)
    w1_p = w1_p.at[:IN_FEATURES, :].set(w1.astype(jnp.bfloat16))
    w2_p = w2.astype(jnp.bfloat16)
    w3_p = jnp.zeros((HIDDEN, OUT_PAD), jnp.bfloat16)
    w3_p = w3_p.at[:, :OUT_FEATURES].set(w3.astype(jnp.bfloat16))
    b3_p = jnp.zeros((1, OUT_PAD), jnp.float32)
    b3_p = b3_p.at[:, :OUT_FEATURES].set(b3)

    grid = (b_pad // tile_b,)
    const = lambda i: (0, 0)  # weights/biases stay VMEM-resident across the grid

    flops = 2 * b_pad * (K_PAD * HIDDEN + HIDDEN * HIDDEN + HIDDEN * OUT_PAD)
    bytes_accessed = (
        x_p.size * 2
        + (w1_p.size + w2_p.size + w3_p.size) * 2
        + (b1.size + b2.size + b3_p.size) * 4
        + b_pad * OUT_PAD * 4
    )

    out = pl.pallas_call(
        mlp_kernel,
        out_shape=jax.ShapeDtypeStruct((b_pad, OUT_PAD), jnp.float32),
        grid=grid,
        in_specs=[
            pl.BlockSpec((tile_b, K_PAD), lambda i: (i, 0)),   # x: pipelined per tile
            pl.BlockSpec((K_PAD, HIDDEN), const),              # W1
            pl.BlockSpec((1, HIDDEN), const),                  # b1 (f32)
            pl.BlockSpec((HIDDEN, HIDDEN), const),             # W2
            pl.BlockSpec((1, HIDDEN), const),                  # b2 (f32)
            pl.BlockSpec((HIDDEN, OUT_PAD), const),            # W3 (lane-padded)
            pl.BlockSpec((1, OUT_PAD), const),                 # b3 (lane-padded, f32)
        ],
        out_specs=pl.BlockSpec((tile_b, OUT_PAD), lambda i: (i, 0)),
        compiler_params=pltpu.CompilerParams(
            dimension_semantics=("parallel",),  # shard batch tiles across v7x TCs
        ),
        cost_estimate=pl.CostEstimate(
            flops=flops, transcendentals=0, bytes_accessed=bytes_accessed
        ),
    )(x_p, w1_p, b1, w2_p, b2, w3_p, b3_p)

    return out[:B, :OUT_FEATURES]


def init_params(key):
    """Deterministic init mimicking PyTorch nn.Linear default (U(-1/sqrt(fan_in), +))."""
    ks = jax.random.split(key, 6)

    def linear(kw, kb, fan_in, fan_out):
        bound = 1.0 / jnp.sqrt(fan_in)
        # stored as (in, out) = W.T relative to PyTorch's (out, in)
        w = jax.random.uniform(kw, (fan_in, fan_out), jnp.float32, -bound, bound)
        b = jax.random.uniform(kb, (1, fan_out), jnp.float32, -bound, bound)
        return w, b

    w1, b1 = linear(ks[0], ks[1], IN_FEATURES, HIDDEN)
    w2, b2 = linear(ks[2], ks[3], HIDDEN, HIDDEN)
    w3, b3 = linear(ks[4], ks[5], HIDDEN, OUT_FEATURES)
    return (w1, b1, w2, b2, w3, b3)


def mlp_reference(x, params):
    """Pure-JAX f32 reference (same math as the PyTorch module)."""
    w1, b1, w2, b2, w3, b3 = params
    h = x.reshape(x.shape[0], -1)
    h = jnp.maximum(h @ w1 + b1, 0.0)
    h = jnp.maximum(h @ w2 + b2, 0.0)
    return h @ w3 + b3


if __name__ == "__main__":
    key = jax.random.PRNGKey(0)
    k_x, k_p = jax.random.split(key)

    # Small MNIST-like batch: NCHW (8, 1, 28, 28) -> flatten -> 784 features.
    x = jax.random.normal(k_x, (8, 1, 28, 28), dtype=jnp.float32)
    params = init_params(k_p)

    fwd = jax.jit(mlp_forward)
    out = jax.block_until_ready(fwd(x, params))
    ref = jax.block_until_ready(mlp_reference(x, params))

    assert out.shape == (8, 5), out.shape
    # bf16 MXU operands with f32 accumulation: loosen tolerance vs. f32 reference.
    max_err = float(jnp.max(jnp.abs(out - ref)))
    assert max_err < 5e-2, f"max abs err {max_err}"
    print("KERNEL_OK")
</pallas_src>

<mosaic_0001>
module attributes {stable_mosaic.version = 11 : i64} {
  func.func @mlp_kernel(%arg0: i32, %arg1: memref<16x896xbf16, #tpu.memory_space<vmem>>, %arg2: memref<896x256xbf16, #tpu.memory_space<vmem>>, %arg3: memref<1x256xf32, #tpu.memory_space<vmem>>, %arg4: memref<256x256xbf16, #tpu.memory_space<vmem>>, %arg5: memref<1x256xf32, #tpu.memory_space<vmem>>, %arg6: memref<256x128xbf16, #tpu.memory_space<vmem>>, %arg7: memref<1x128xf32, #tpu.memory_space<vmem>>, %arg8: memref<16x128xf32, #tpu.memory_space<vmem>>) attributes {dimension_semantics = [#tpu.dimension_semantics<parallel>], iteration_bounds = array<i64: 1>, scalar_prefetch = 0 : i64, scratch_operands = 0 : i64, tpu.core_type = #tpu.core_type<tc>, window_params = [{transform_indices = @transform_0, window_bounds = array<i64: 16, 896>}, {pipeline_mode = #tpu.pipeline_mode<synchronous>, transform_indices = @transform_1, window_bounds = array<i64: 896, 256>}, {pipeline_mode = #tpu.pipeline_mode<synchronous>, transform_indices = @transform_2, window_bounds = array<i64: 1, 256>}, {pipeline_mode = #tpu.pipeline_mode<synchronous>, transform_indices = @transform_3, window_bounds = array<i64: 256, 256>}, {pipeline_mode = #tpu.pipeline_mode<synchronous>, transform_indices = @transform_4, window_bounds = array<i64: 1, 256>}, {pipeline_mode = #tpu.pipeline_mode<synchronous>, transform_indices = @transform_5, window_bounds = array<i64: 256, 128>}, {pipeline_mode = #tpu.pipeline_mode<synchronous>, transform_indices = @transform_6, window_bounds = array<i64: 1, 128>}, {transform_indices = @transform_7, window_bounds = array<i64: 16, 128>}]} {
    %c0 = arith.constant 0 : index
    %c0_0 = arith.constant 0 : index
    %0 = vector.load %arg1[%c0, %c0_0] : memref<16x896xbf16, #tpu.memory_space<vmem>>, vector<16x896xbf16>
    %c0_1 = arith.constant 0 : index
    %c0_2 = arith.constant 0 : index
    %1 = vector.load %arg2[%c0_1, %c0_2] : memref<896x256xbf16, #tpu.memory_space<vmem>>, vector<896x256xbf16>
    %cst = arith.constant dense<0.000000e+00> : vector<16x256xf32>
    %2 = tpu.matmul %0, %1, %cst {dimension_numbers = #tpu.dot_dimension_numbers<[1], [0], [0], [1], [0, 0, 1, 1], [], []>} : vector<16x896xbf16>, vector<896x256xbf16>, vector<16x256xf32> -> vector<16x256xf32>
    %c0_3 = arith.constant 0 : index
    %c0_4 = arith.constant 0 : index
    %3 = vector.load %arg3[%c0_3, %c0_4] : memref<1x256xf32, #tpu.memory_space<vmem>>, vector<1x256xf32>
    %4 = vector.broadcast %3 : vector<1x256xf32> to vector<16x256xf32>
    %5 = arith.addf %2, %4 : vector<16x256xf32>
    %cst_5 = arith.constant 0.000000e+00 : f32
    %6 = vector.broadcast %cst_5 : f32 to vector<16x256xf32>
    %7 = arith.maximumf %5, %6 : vector<16x256xf32>
    %8 = arith.truncf %7 : vector<16x256xf32> to vector<16x256xbf16>
    %c0_6 = arith.constant 0 : index
    %c0_7 = arith.constant 0 : index
    %9 = vector.load %arg4[%c0_6, %c0_7] : memref<256x256xbf16, #tpu.memory_space<vmem>>, vector<256x256xbf16>
    %cst_8 = arith.constant dense<0.000000e+00> : vector<16x256xf32>
    %10 = tpu.matmul %8, %9, %cst_8 {dimension_numbers = #tpu.dot_dimension_numbers<[1], [0], [0], [1], [0, 0, 1, 1], [], []>} : vector<16x256xbf16>, vector<256x256xbf16>, vector<16x256xf32> -> vector<16x256xf32>
    %c0_9 = arith.constant 0 : index
    %c0_10 = arith.constant 0 : index
    %11 = vector.load %arg5[%c0_9, %c0_10] : memref<1x256xf32, #tpu.memory_space<vmem>>, vector<1x256xf32>
    %12 = vector.broadcast %11 : vector<1x256xf32> to vector<16x256xf32>
    %13 = arith.addf %10, %12 : vector<16x256xf32>
    %cst_11 = arith.constant 0.000000e+00 : f32
    %14 = vector.broadcast %cst_11 : f32 to vector<16x256xf32>
    %15 = arith.maximumf %13, %14 : vector<16x256xf32>
    %16 = arith.truncf %15 : vector<16x256xf32> to vector<16x256xbf16>
    %c0_12 = arith.constant 0 : index
    %c0_13 = arith.constant 0 : index
    %17 = vector.load %arg6[%c0_12, %c0_13] : memref<256x128xbf16, #tpu.memory_space<vmem>>, vector<256x128xbf16>
    %cst_14 = arith.constant dense<0.000000e+00> : vector<16x128xf32>
    %18 = tpu.matmul %16, %17, %cst_14 {dimension_numbers = #tpu.dot_dimension_numbers<[1], [0], [0], [1], [0, 0, 1, 1], [], []>} : vector<16x256xbf16>, vector<256x128xbf16>, vector<16x128xf32> -> vector<16x128xf32>
    %c0_15 = arith.constant 0 : index
    %c0_16 = arith.constant 0 : index
    %19 = vector.load %arg7[%c0_15, %c0_16] : memref<1x128xf32, #tpu.memory_space<vmem>>, vector<1x128xf32>
    %20 = vector.broadcast %19 : vector<1x128xf32> to vector<16x128xf32>
    %21 = arith.addf %18, %20 : vector<16x128xf32>
    %c0_17 = arith.constant 0 : index
    %c0_18 = arith.constant 0 : index
    %22 = vector.load %arg8[%c0_17, %c0_18] : memref<16x128xf32, #tpu.memory_space<vmem>>, vector<16x128xf32>
    tpu.vector_store %arg8[%c0_17, %c0_18], %21 {strides = array<i32>} : memref<16x128xf32, #tpu.memory_space<vmem>>, vector<16x128xf32>,
    return
  }
  func.func @transform_0(%arg0: i32) -> (i32, i32) {
    %c0_i32 = arith.constant 0 : i32
    %c0_i32_0 = arith.constant 0 : i32
    return %arg0, %c0_i32 : i32, i32
  }
  func.func @transform_1(%arg0: i32) -> (i32, i32) {
    %c0_i32 = arith.constant 0 : i32
    %c0_i32_0 = arith.constant 0 : i32
    %c0_i32_1 = arith.constant 0 : i32
    return %c0_i32, %c0_i32_0 : i32, i32
  }
  func.func @transform_2(%arg0: i32) -> (i32, i32) {
    %c0_i32 = arith.constant 0 : i32
    %c0_i32_0 = arith.constant 0 : i32
    %c0_i32_1 = arith.constant 0 : i32
    return %c0_i32, %c0_i32_0 : i32, i32
  }
  func.func @transform_3(%arg0: i32) -> (i32, i32) {
    %c0_i32 = arith.constant 0 : i32
    %c0_i32_0 = arith.constant 0 : i32
    %c0_i32_1 = arith.constant 0 : i32
    return %c0_i32, %c0_i32_0 : i32, i32
  }
  func.func @transform_4(%arg0: i32) -> (i32, i32) {
    %c0_i32 = arith.constant 0 : i32
    %c0_i32_0 = arith.constant 0 : i32
    %c0_i32_1 = arith.constant 0 : i32
    return %c0_i32, %c0_i32_0 : i32, i32
  }
  func.func @transform_5(%arg0: i32) -> (i32, i32) {
    %c0_i32 = arith.constant 0 : i32
    %c0_i32_0 = arith.constant 0 : i32
    %c0_i32_1 = arith.constant 0 : i32
    return %c0_i32, %c0_i32_0 : i32, i32
  }
  func.func @transform_6(%arg0: i32) -> (i32, i32) {
    %c0_i32 = arith.constant 0 : i32
    %c0_i32_0 = arith.constant 0 : i32
    %c0_i32_1 = arith.constant 0 : i32
    return %c0_i32, %c0_i32_0 : i32, i32
  }
  func.func @transform_7(%arg0: i32) -> (i32, i32) {
    %c0_i32 = arith.constant 0 : i32
    %c0_i32_0 = arith.constant 0 : i32
    return %arg0, %c0_i32 : i32, i32
  }
}

</mosaic_0001>

<bundles_post_ra>
// kernel: mlp_forward.1
= control target key start
LH: loop header
LB: loop body
LE: loop exit
PB: predicated region body
PF: predicated region fallthrough
CT: control target
= control target key end

     0   :  { %s3253_s1 = inlined_call_operand.vmem [shape: bf16[896,256], index: 1, kind: input, shape index: {}]   ;;  %s3254_s0 = inlined_call_operand.vmem [shape: bf16[16,896], index: 0, kind: input, shape index: {}]   ;;  %s3255_s3 = inlined_call_operand.vmem [shape: bf16[256,256], index: 3, kind: input, shape index: {}]   ;;  %s3256_s2 = inlined_call_operand.vmem [shape: f32[1,256], index: 2, kind: input, shape index: {}]   ;;  %s3257_s5 = inlined_call_operand.vmem [shape: bf16[256,128], index: 5, kind: input, shape index: {}]   ;;  %s3258_s4 = inlined_call_operand.vmem [shape: f32[1,256], index: 4, kind: input, shape index: {}]   ;;  %s3259_s6 = inlined_call_operand.vmem [shape: f32[1,128], index: 6, kind: input, shape index: {}]   ;;  %s3260_s7 = inlined_call_operand.vmem [shape: f32[16,128], index: 7, kind: output, shape index: {}]  }
   0x1   :  { %v1462_v0 = vld [vmem:[%s3253_s1 + $0x70] sm:$0xf]  ;;  %v2066_v1 = vld [vmem:[%s3253_s1 + $0x74] sm:$0xf0]  ;;  %v1454_v9 = vld [vmem:[%s3253_s1 + $0x60] sm:$0xf] }
   0x2   :  { %v1526_v2 = vld [vmem:[%s3253_s1 + $0xf0] sm:$0xf]  ;;  %v1463_v3 = vor.u32 %v2066_v1, %v1462_v0  ;;  %v2082_v4 = vld [vmem:[%s3253_s1 + $0xf4] sm:$0xf0]  ;;  %v2064_v10 = vld [vmem:[%s3253_s1 + $0x64] sm:$0xf0] }
   0x3   :  { %v1590_v5 = vld [vmem:[%s3253_s1 + $0x170] sm:$0xf]  ;;  %v2098_v6 = vld [vmem:[%s3253_s1 + $0x174] sm:$0xf0]  ;;  %v1527_v7 = vor.u32 %v2082_v4, %v1526_v2  ;;  %v1518_v11 = vld [vmem:[%s3253_s1 + $0xe0] sm:$0xf]  ;;  %v1455_v12 = vor.u32 %v2064_v10, %v1454_v9 }
   0x4   :  { %v1591_v8 = vor.u32 %v2098_v6, %v1590_v5  ;;  %748 = vmatpush.bf16.msra.mxu0 %v1463_v3  ;;  %v2080_v13 = vld [vmem:[%s3253_s1 + $0xe4] sm:$0xf0]  ;;  %v1582_v14 = vld [vmem:[%s3253_s1 + $0x160] sm:$0xf]  ;;  %v1654_v18 = vld [vmem:[%s3253_s1 + $0x1f0] sm:$0xf] }
   0x5   :  { %v2096_v15 = vld [vmem:[%s3253_s1 + $0x164] sm:$0xf0]  ;;  %762 = vmatpush.bf16.msra.mxu1 %v1527_v7  ;;  %v1519_v16 = vor.u32 %v2080_v13, %v1518_v11  ;;  %v2114_v19 = vld [vmem:[%s3253_s1 + $0x1f4] sm:$0xf0]  ;;  %v1446_v20 = vld [vmem:[%s3253_s1 + $0x50] sm:$0xf] }
   0x6   :  { %776 = vmatpush.bf16.msra.mxu2 %v1591_v8  ;;  %v1583_v17 = vor.u32 %v2096_v15, %v1582_v14  ;;  %v1655_v21 = vor.u32 %v2114_v19, %v1654_v18  ;;  %v2062_v22 = vld [vmem:[%s3253_s1 + $0x54] sm:$0xf0]  ;;  %v1510_v23 = vld [vmem:[%s3253_s1 + $0xd0] sm:$0xf]  ;;  %v1646_v27 = vld [vmem:[%s3253_s1 + $0x1e0] sm:$0xf] }
   0x7   :  { %v2078_v24 = vld [vmem:[%s3253_s1 + $0xd4] sm:$0xf0]  ;;  %v1574_v25 = vld [vmem:[%s3253_s1 + $0x150] sm:$0xf]  ;;  %v1447_v28 = vor.u32 %v2062_v22, %v1446_v20  ;;  %v2112_v29 = vld [vmem:[%s3253_s1 + $0x1e4] sm:$0xf0] }
   0x8   :  { %v2094_v26 = vld [vmem:[%s3253_s1 + $0x154] sm:$0xf0]  ;;  %749 = vmatpush.bf16.msra.mxu0 %v1455_v12  ;;  %790 = vmatpush.bf16.msra.mxu3 %v1655_v21  ;;  %v1438_v30 = vld [vmem:[%s3253_s1 + $0x40] sm:$0xf]  ;;  %v2060_v31 = vld [vmem:[%s3253_s1 + $0x44] sm:$0xf0]  ;;  %v1511_v32 = vor.u32 %v2078_v24, %v1510_v23  ;;  %v1647_v34 = vor.u32 %v2112_v29, %v1646_v27 }
   0x9   :  { %763 = vmatpush.bf16.msra.mxu1 %v1519_v16  ;;  %v1575_v33 = vor.u32 %v2094_v26, %v1574_v25  ;;  %v1502_v35 = vld [vmem:[%s3253_s1 + $0xc0] sm:$0xf]  ;;  %v2076_v36 = vld [vmem:[%s3253_s1 + $0xc4] sm:$0xf0]  ;;  %v1638_v39 = vld [vmem:[%s3253_s1 + $0x1d0] sm:$0xf]  ;;  %v1439_v41 = vor.u32 %v2060_v31, %v1438_v30 }
   0xa   :  { %777 = vmatpush.bf16.msra.mxu2 %v1583_v17  ;;  %v1566_v37 = vld [vmem:[%s3253_s1 + $0x140] sm:$0xf]  ;;  %v2092_v38 = vld [vmem:[%s3253_s1 + $0x144] sm:$0xf0]  ;;  %v2110_v40 = vld [vmem:[%s3253_s1 + $0x1d4] sm:$0xf0]  ;;  %v1503_v45 = vor.u32 %v2076_v36, %v1502_v35 }
   0xb   :  { %v1639_v42 = vor.u32 %v2110_v40, %v1638_v39  ;;  %v1430_v43 = vld [vmem:[%s3253_s1 + $0x30] sm:$0xf]  ;;  %v2058_v44 = vld [vmem:[%s3253_s1 + $0x34] sm:$0xf0]  ;;  %v1567_v46 = vor.u32 %v2092_v38, %v1566_v37  ;;  %v1630_v48 = vld [vmem:[%s3253_s1 + $0x1c0] sm:$0xf] }
   0xc   :  { %750 = vmatpush.bf16.msra.mxu0 %v1447_v28  ;;  %791 = vmatpush.bf16.msra.mxu3 %v1647_v34  ;;  %v1494_v47 = vld [vmem:[%s3253_s1 + $0xb0] sm:$0xf]  ;;  %v2108_v49 = vld [vmem:[%s3253_s1 + $0x1c4] sm:$0xf0]  ;;  %v2074_v50 = vld [vmem:[%s3253_s1 + $0xb4] sm:$0xf0]  ;;  %v1431_v53 = vor.u32 %v2058_v44, %v1430_v43 }
   0xd   :  { %764 = vmatpush.bf16.msra.mxu1 %v1511_v32  ;;  %v1558_v51 = vld [vmem:[%s3253_s1 + $0x130] sm:$0xf]  ;;  %v2090_v52 = vld [vmem:[%s3253_s1 + $0x134] sm:$0xf0]  ;;  %v1631_v54 = vor.u32 %v2108_v49, %v1630_v48  ;;  %v1422_v55 = vld [vmem:[%s3253_s1 + $0x20] sm:$0xf]  ;;  %v1495_v57 = vor.u32 %v2074_v50, %v1494_v47 }
   0xe   :  { %778 = vmatpush.bf16.msra.mxu2 %v1575_v33  ;;  %v2056_v56 = vld [vmem:[%s3253_s1 + $0x24] sm:$0xf0]  ;;  %v1559_v58 = vor.u32 %v2090_v52, %v1558_v51  ;;  %v1486_v59 = vld [vmem:[%s3253_s1 + $0xa0] sm:$0xf]  ;;  %v1622_v60 = vld [vmem:[%s3253_s1 + $0x1b0] sm:$0xf] }
   0xf   :  { %v2106_v61 = vld [vmem:[%s3253_s1 + $0x1b4] sm:$0xf0]  ;;  %v2072_v62 = vld [vmem:[%s3253_s1 + $0xa4] sm:$0xf0]  ;;  %v1550_v63 = vld [vmem:[%s3253_s1 + $0x120] sm:$0xf]  ;;  %v1423_v1 = vor.u32 %v2056_v56, %v1422_v55 }
  0x10   :  { %751 = vmatpush.bf16.msra.mxu0 %v1439_v41  ;;  %792 = vmatpush.bf16.msra.mxu3 %v1639_v42  ;;  %v2088_v0 = vld [vmem:[%s3253_s1 + $0x124] sm:$0xf0]  ;;  %v1623_v2 = vor.u32 %v2106_v61, %v1622_v60  ;;  %v1414_v3 = vld [vmem:[%s3253_s1 + $0x10] sm:$0xf]  ;;  %v2054_v4 = vld [vmem:[%s3253_s1 + $0x14] sm:$0xf0]  ;;  %v1487_v5 = vor.u32 %v2072_v62, %v1486_v59 }
  0x11   :  { %765 = vmatpush.bf16.msra.mxu1 %v1503_v45  ;;  %v1551_v6 = vor.u32 %v2088_v0, %v1550_v63  ;;  %v1478_v7 = vld [vmem:[%s3253_s1 + $0x90] sm:$0xf]  ;;  %v1614_v8 = vld [vmem:[%s3253_s1 + $0x1a0] sm:$0xf]  ;;  %v2104_v9 = vld [vmem:[%s3253_s1 + $0x1a4] sm:$0xf0]  ;;  %v1415_v13 = vor.u32 %v2054_v4, %v1414_v3 }
  0x12   :  { %779 = vmatpush.bf16.msra.mxu2 %v1567_v46  ;;  %v2070_v10 = vld [vmem:[%s3253_s1 + $0x94] sm:$0xf0]  ;;  %v1542_v11 = vld [vmem:[%s3253_s1 + $0x110] sm:$0xf]  ;;  %v1615_v14 = vor.u32 %v2104_v9, %v1614_v8  ;;  %v1406_v15 = vld [vmem:[%s3253_s1] sm:$0xf] }
  0x13   :  { %v2086_v12 = vld [vmem:[%s3253_s1 + $0x114] sm:$0xf0]  ;;  %v2052_v16 = vld [vmem:[%s3253_s1 + $0x4] sm:$0xf0]  ;;  %v1470_v17 = vld [vmem:[%s3253_s1 + $0x80] sm:$0xf]  ;;  %v1479_v18 = vor.u32 %v2070_v10, %v1478_v7 }
  0x14   :  { %752 = vmatpush.bf16.msra.mxu0 %v1431_v53  ;;  %793 = vmatpush.bf16.msra.mxu3 %v1631_v54  ;;  %v1543_v19 = vor.u32 %v2086_v12, %v1542_v11  ;;  %v2068_v20 = vld [vmem:[%s3253_s1 + $0x84] sm:$0xf0]  ;;  %v1606_v21 = vld [vmem:[%s3253_s1 + $0x190] sm:$0xf]  ;;  %v2102_v22 = vld [vmem:[%s3253_s1 + $0x194] sm:$0xf0]  ;;  %v1407_v29 = vor.u32 %v2052_v16, %v1406_v15 }
  0x15   :  { %766 = vmatpush.bf16.msra.mxu1 %v1495_v57  ;;  %v1534_v23 = vld [vmem:[%s3253_s1 + $0x100] sm:$0xf]  ;;  %v2084_v24 = vld [vmem:[%s3253_s1 + $0x104] sm:$0xf0]  ;;  %v1718_v25 = vld [vmem:[%s3253_s1 + $0x270] sm:$0xf]  ;;  %v1607_v30 = vor.u32 %v2102_v22, %v1606_v21  ;;  %v1471_v33 = vor.u32 %v2068_v20, %v1470_v17 }
  0x16   :  { %780 = vmatpush.bf16.msra.mxu2 %v1559_v58  ;;  %v2130_v26 = vld [vmem:[%s3253_s1 + $0x274] sm:$0xf0]  ;;  %v1782_v27 = vld [vmem:[%s3253_s1 + $0x2f0] sm:$0xf]  ;;  %v1535_v34 = vor.u32 %v2084_v24, %v1534_v23  ;;  %v1598_v35 = vld [vmem:[%s3253_s1 + $0x180] sm:$0xf] }
  0x17   :  { %v2146_v28 = vld [vmem:[%s3253_s1 + $0x2f4] sm:$0xf0]  ;;  %v1846_v31 = vld [vmem:[%s3253_s1 + $0x370] sm:$0xf]  ;;  %v2100_v36 = vld [vmem:[%s3253_s1 + $0x184] sm:$0xf0]  ;;  %v1719_v38 = vor.u32 %v2130_v26, %v1718_v25 }
  0x18   :  { %753 = vmatpush.bf16.msra.mxu0 %v1423_v1  ;;  %794 = vmatpush.bf16.msra.mxu3 %v1623_v2  ;;  %v2162_v32 = vld [vmem:[%s3253_s1 + $0x374] sm:$0xf0]  ;;  %v1710_v37 = vld [vmem:[%s3253_s1 + $0x260] sm:$0xf]  ;;  %v1783_v39 = vor.u32 %v2146_v28, %v1782_v27  ;;  %v2128_v40 = vld [vmem:[%s3253_s1 + $0x264] sm:$0xf0]  ;;  %v1599_v47 = vor.u32 %v2100_v36, %v1598_v35 }
  0x19   :  { %767 = vmatpush.bf16.msra.mxu1 %v1487_v5  ;;  %v2065_v41 = vld [vmem:[%s3253_s1 + $0x74] sm:$0xf]  ;;  %v1464_v42 = vld [vmem:[%s3253_s1 + $0x78] sm:$0xf0]  ;;  %v1847_v43 = vor.u32 %v2162_v32, %v1846_v31  ;;  %v1774_v44 = vld [vmem:[%s3253_s1 + $0x2e0] sm:$0xf]  ;;  %v1711_v56 = vor.u32 %v2128_v40, %v1710_v37 }
  0x1a   :  { %781 = vmatpush.bf16.msra.mxu2 %v1551_v6  ;;  %v2144_v45 = vld [vmem:[%s3253_s1 + $0x2e4] sm:$0xf0]  ;;  %v1838_v46 = vld [vmem:[%s3253_s1 + $0x360] sm:$0xf]  ;;  %v2047_v50 = vld [vmem:[%s3254_s0 + $0x18] sm:$0xf0]  ;;  %v1467_v51 = vor.u32 %v2065_v41, %v1464_v42 }
  0x1b   :  { %v2160_v48 = vld [vmem:[%s3253_s1 + $0x364] sm:$0xf0]  ;;  %v1378_v49 = vld [vmem:[%s3254_s0] sm:$0xf]  ;;  %v1702_v52 = vld [vmem:[%s3253_s1 + $0x250] sm:$0xf]  ;;  %v1775_v57 = vor.u32 %v2144_v45, %v1774_v44 }
  0x1c   :  { %754 = vmatpush.bf16.msra.mxu0 %v1415_v13  ;;  %795 = vmatpush.bf16.msra.mxu3 %v1615_v14  ;;  %v2495_v53 = vor.u32 %v2047_v50, %v1378_v49  ;;  %v1386_v54 = vld [vmem:[%s3254_s0 + $0x8] sm:$0xf]  ;;  %v2048_v55 = vld [vmem:[%s3254_s0 + $0x20] sm:$0xf0]  ;;  %v2126_v58 = vld [vmem:[%s3253_s1 + $0x254] sm:$0xf0]  ;;  %v1839_v62 = vor.u32 %v2160_v48, %v1838_v46 }
  0x1d   :  { %768 = vmatpush.bf16.msra.mxu1 %v1479_v18  ;;  %v2063_v59 = vld [vmem:[%s3253_s1 + $0x64] sm:$0xf]  ;;  %v1456_v60 = vld [vmem:[%s3253_s1 + $0x68] sm:$0xf0]  ;;  %v2512_v61 = vor.u32 %v2048_v55, %v1386_v54  ;;  %v1766_v63 = vld [vmem:[%s3253_s1 + $0x2d0] sm:$0xf]  ;;  %v1703_v9 = vor.u32 %v2126_v58, %v1702_v52 }
  0x1e   :  { %782 = vmatpush.bf16.msra.mxu2 %v1543_v19  ;;  %v2142_v0 = vld [vmem:[%s3253_s1 + $0x2d4] sm:$0xf0]  ;;  %v2044_v1 = vld [vmem:[%s3254_s0 + $0x4] sm:$0xf]  ;;  %v1830_v2 = vld [vmem:[%s3253_s1 + $0x350] sm:$0xf]  ;;  %v1459_v5 = vor.u32 %v2063_v59, %v1456_v60 }
  0x1f   :  { %v2158_v3 = vld [vmem:[%s3253_s1 + $0x354] sm:$0xf0]  ;;  %v1380_v4 = vld [vmem:[%s3254_s0 + $0x1c] sm:$0xf0]  ;;  %v2124_v7 = vld [vmem:[%s3253_s1 + $0x244] sm:$0xf0]  ;;  %v1767_v10 = vor.u32 %v2142_v0, %v1766_v63 }
  0x20   :  { %755 = vmatpush.bf16.msra.mxu0 %v1407_v29  ;;  %796 = vmatpush.bf16.msra.mxu3 %v1607_v30  ;;  %v1694_v6 = vld [vmem:[%s3253_s1 + $0x240] sm:$0xf]  ;;  %v2540_v8 = vor.u32 %v2044_v1, %v1380_v4  ;;  %v2061_v12 = vld [vmem:[%s3253_s1 + $0x54] sm:$0xf]  ;;  %v1448_v13 = vld [vmem:[%s3253_s1 + $0x58] sm:$0xf0]  ;;  %v1831_v14 = vor.u32 %v2158_v3, %v1830_v2 }
  0x21   :  { %769 = vmatpush.bf16.msra.mxu1 %v1471_v33  ;;  %v1758_v11 = vld [vmem:[%s3253_s1 + $0x2c0] sm:$0xf]  ;;  %v2140_v15 = vld [vmem:[%s3253_s1 + $0x2c4] sm:$0xf0]  ;;  %v2045_v16 = vld [vmem:[%s3254_s0 + $0xc] sm:$0xf]  ;;  %v1451_v21 = vor.u32 %v2061_v12, %v1448_v13  ;;  %v1695_v22 = vor.u32 %v2124_v7, %v1694_v6 }
  0x22   :  { %783 = vmatpush.bf16.msra.mxu2 %v1535_v34  ;;  %v1388_v17 = vld [vmem:[%s3254_s0 + $0x24] sm:$0xf0]  ;;  %v1822_v18 = vld [vmem:[%s3253_s1 + $0x340] sm:$0xf]  ;;  %v1759_v23 = vor.u32 %v2140_v15, %v1758_v11  ;;  %v1686_v24 = vld [vmem:[%s3253_s1 + $0x230] sm:$0xf] }
  0x23   :  { %756 = vmatmul.bf16.vlgmr.msra.gmra.mxu0 %v2495_v53  ;;  %v2156_v19 = vld [vmem:[%s3253_s1 + $0x344] sm:$0xf0]  ;;  %v2567_v20 = vor.u32 %v2045_v16, %v1388_v17  ;;  %v2059_v25 = vld [vmem:[%s3253_s1 + $0x44] sm:$0xf]  ;;  %v1440_v26 = vld [vmem:[%s3253_s1 + $0x48] sm:$0xf0] }
  0x24   :  { %804 = vmatpush.bf16.msrb.mxu0 %v1719_v38  ;;  %797 = vmatpush.bf16.msra.mxu3 %v1599_v47  ;;  %v1823_v27 = vor.u32 %v2156_v19, %v1822_v18  ;;  %v2122_v28 = vld [vmem:[%s3253_s1 + $0x234] sm:$0xf0]  ;;  %v1750_v29 = vld [vmem:[%s3253_s1 + $0x2b0] sm:$0xf]  ;;  %v1443_v33 = vor.u32 %v2059_v25, %v1440_v26  ;;  %v1678_v36 = vld [vmem:[%s3253_s1 + $0x220] sm:$0xf] }
  0x25   :  { %818 = vmatpush.bf16.msrb.mxu1 %v1783_v39  ;;  %784 = vmatmul.bf16.vlgmr.msra.gmra.mxu2 %v2512_v61  ;;  %v2138_v30 = vld [vmem:[%s3253_s1 + $0x2b4] sm:$0xf0]  ;;  %v1814_v31 = vld [vmem:[%s3253_s1 + $0x330] sm:$0xf]  ;;  %v1687_v34 = vor.u32 %v2122_v28, %v1686_v24  ;;  %v2057_v37 = vld [vmem:[%s3253_s1 + $0x34] sm:$0xf] }
  0x26   :  { %832 = vmatpush.bf16.msrb.mxu2 %v1847_v43  ;;  %770 = vmatmul.bf16.vlgmr.msra.gmra.mxu1 %v2540_v8  ;;  %v2154_v32 = vld [vmem:[%s3253_s1 + $0x334] sm:$0xf0]  ;;  %v1751_v35 = vor.u32 %v2138_v30, %v1750_v29  ;;  %v1432_v38 = vld [vmem:[%s3253_s1 + $0x38] sm:$0xf0]  ;;  %v2120_v40 = vld [vmem:[%s3253_s1 + $0x224] sm:$0xf0] }
  0x27   :  { %798 = vmatmul.bf16.vlgmr.msra.gmra.mxu3 %v2567_v20  ;;  %v1815_v39 = vor.u32 %v2154_v32, %v1814_v31  ;;  %v1742_v41 = vld [vmem:[%s3253_s1 + $0x2a0] sm:$0xf]  ;;  %v2136_v42 = vld [vmem:[%s3253_s1 + $0x2a4] sm:$0xf0]  ;;  %v1435_v45 = vor.u32 %v2057_v37, %v1432_v38  ;;  %v1679_v46 = vor.u32 %v2120_v40, %v1678_v36  ;;  %v1670_v48 = vld [vmem:[%s3253_s1 + $0x210] sm:$0xf] }
  0x28   :  { %846 = vmatpush.bf16.msrb.mxu3 %v1467_v51  ;;  %805 = vmatpush.bf16.msrb.mxu0 %v1711_v56  ;;  %v1806_v43 = vld [vmem:[%s3253_s1 + $0x320] sm:$0xf]  ;;  %v2152_v44 = vld [vmem:[%s3253_s1 + $0x324] sm:$0xf0]  ;;  %v1743_v47 = vor.u32 %v2136_v42, %v1742_v41  ;;  %v2055_v49 = vld [vmem:[%s3253_s1 + $0x24] sm:$0xf] }
  0x29   :  { %819 = vmatpush.bf16.msrb.mxu1 %v1775_v57  ;;  %v1424_v50 = vld [vmem:[%s3253_s1 + $0x28] sm:$0xf0]  ;;  %v1807_v51 = vor.u32 %v2152_v44, %v1806_v43  ;;  %v2118_v52 = vld [vmem:[%s3253_s1 + $0x214] sm:$0xf0]  ;;  %v1734_v54 = vld [vmem:[%s3253_s1 + $0x290] sm:$0xf] }
  0x2a   :  { %833 = vmatpush.bf16.msrb.mxu2 %v1839_v62  ;;  %v2134_v55 = vld [vmem:[%s3253_s1 + $0x294] sm:$0xf0]  ;;  %v1798_v56 = vld [vmem:[%s3253_s1 + $0x310] sm:$0xf]  ;;  %v1427_v58 = vor.u32 %v2055_v49, %v1424_v50  ;;  %v1662_v59 = vld [vmem:[%s3253_s1 + $0x200] sm:$0xf]  ;;  %v1671_v0 = vor.u32 %v2118_v52, %v1670_v48 }
  0x2b   :  { %v2150_v57 = vld [vmem:[%s3253_s1 + $0x314] sm:$0xf0]  ;;  %v2116_v60 = vld [vmem:[%s3253_s1 + $0x204] sm:$0xf0]  ;;  %v1726_v62 = vld [vmem:[%s3253_s1 + $0x280] sm:$0xf]  ;;  %v1735_v1 = vor.u32 %v2134_v55, %v1734_v54 }
  0x2c   :  { %847 = vmatpush.bf16.msrb.mxu3 %v1459_v5  ;;  %806 = vmatpush.bf16.msrb.mxu0 %v1703_v9  ;;  %v2132_v63 = vld [vmem:[%s3253_s1 + $0x284] sm:$0xf0]  ;;  %v1790_v2 = vld [vmem:[%s3253_s1 + $0x300] sm:$0xf]  ;;  %v2053_v4 = vld [vmem:[%s3253_s1 + $0x14] sm:$0xf]  ;;  %v1799_v6 = vor.u32 %v2150_v57, %v1798_v56  ;;  %v1663_v19 = vor.u32 %v2116_v60, %v1662_v59 }
  0x2d   :  { %820 = vmatpush.bf16.msrb.mxu1 %v1767_v10  ;;  %v2148_v3 = vld [vmem:[%s3253_s1 + $0x304] sm:$0xf0]  ;;  %v1416_v5 = vld [vmem:[%s3253_s1 + $0x18] sm:$0xf0]  ;;  %v2081_v7 = vld [vmem:[%s3253_s1 + $0xf4] sm:$0xf] }
  0x2e   :  { %834 = vmatpush.bf16.msrb.mxu2 %v1831_v14  ;;  %v1528_v9 = vld [vmem:[%s3253_s1 + $0xf8] sm:$0xf0]  ;;  %v2097_v10 = vld [vmem:[%s3253_s1 + $0x174] sm:$0xf]  ;;  %v1394_v12 = vld [vmem:[%s3254_s0 + $0x10] sm:$0xf]  ;;  %v1419_v14 = vor.u32 %v2053_v4, %v1416_v5  ;;  %v1791_v25 = vor.u32 %v2148_v3, %v1790_v2 }
  0x2f   :  { %v1592_v11 = vld [vmem:[%s3253_s1 + $0x178] sm:$0xf0]  ;;  %v2049_v13 = vld [vmem:[%s3254_s0 + $0x28] sm:$0xf0]  ;;  %v1402_v15 = vld [vmem:[%s3254_s0 + $0x18] sm:$0xf]  ;;  %v1531_v26 = vor.u32 %v2081_v7, %v1528_v9 }
  0x30   :  { %848 = vmatpush.bf16.msrb.mxu3 %v1451_v21  ;;  %807 = vmatpush.bf16.msrb.mxu0 %v1695_v22  ;;  %v2050_v16 = vld [vmem:[%s3254_s0 + $0x30] sm:$0xf0]  ;;  %v1656_v18 = vld [vmem:[%s3253_s1 + $0x1f8] sm:$0xf0]  ;;  %v1727_v21 = vor.u32 %v2132_v63, %v1726_v62  ;;  %v2051_v24 = vld [vmem:[%s3253_s1 + $0x4] sm:$0xf]  ;;  %v1595_v30 = vor.u32 %v2097_v10, %v1592_v11 }
  0x31   :  { %821 = vmatpush.bf16.msrb.mxu1 %v1759_v23  ;;  %v2113_v17 = vld [vmem:[%s3253_s1 + $0x1f4] sm:$0xf]  ;;  %v1396_v23 = vld [vmem:[%s3254_s0 + $0x2c] sm:$0xf0]  ;;  %v2079_v28 = vld [vmem:[%s3253_s1 + $0xe4] sm:$0xf]  ;;  %v2736_v40 = vor.u32 %v2050_v16, %v1402_v15 }
  0x32   :  { %835 = vmatpush.bf16.msrb.mxu2 %v1823_v27  ;;  %v2046_v22 = vld [vmem:[%s3254_s0 + $0x14] sm:$0xf]  ;;  %v1408_v27 = vld [vmem:[%s3253_s1 + $0x8] sm:$0xf0]  ;;  %v1659_v31 = vor.u32 %v2113_v17, %v1656_v18  ;;  %v2095_v32 = vld [vmem:[%s3253_s1 + $0x164] sm:$0xf] }
  0x33   :  { %v1520_v29 = vld [vmem:[%s3253_s1 + $0xe8] sm:$0xf0]  ;;  %v2725_v36 = vor.u32 %v2046_v22, %v1396_v23  ;;  %v2111_v38 = vld [vmem:[%s3253_s1 + $0x1e4] sm:$0xf]  ;;  %v1411_v41 = vor.u32 %v2051_v24, %v1408_v27  ;;  %v2077_v44 = vld [vmem:[%s3253_s1 + $0xd4] sm:$0xf] }
  0x34   :  { %849 = vmatpush.bf16.msrb.mxu3 %v1443_v33  ;;  %808 = vmatpush.bf16.msrb.mxu0 %v1687_v34  ;;  %v2129_v33 = vld [vmem:[%s3253_s1 + $0x274] sm:$0xf]  ;;  %v1720_v34 = vld [vmem:[%s3253_s1 + $0x278] sm:$0xf0]  ;;  %v1584_v37 = vld [vmem:[%s3253_s1 + $0x168] sm:$0xf0]  ;;  %v1523_v42 = vor.u32 %v2079_v28, %v1520_v29 }
  0x35   :  { %822 = vmatpush.bf16.msrb.mxu1 %v1751_v35  ;;  %v2723_v35 = vor.u32 %v2049_v13, %v1394_v12  ;;  %v1723_v43 = vor.u32 %v2129_v33, %v1720_v34  ;;  %v2093_v48 = vld [vmem:[%s3253_s1 + $0x154] sm:$0xf]  ;;  %v2127_v49 = vld [vmem:[%s3253_s1 + $0x264] sm:$0xf]  ;;  %v1712_v50 = vld [vmem:[%s3253_s1 + $0x268] sm:$0xf0] }
  0x36   :  { %836 = vmatpush.bf16.msrb.mxu2 %v1815_v39  ;;  %v1648_v39 = vld [vmem:[%s3253_s1 + $0x1e8] sm:$0xf0]  ;;  %v2109_v52 = vld [vmem:[%s3253_s1 + $0x1d4] sm:$0xf]  ;;  %v1640_v54 = vld [vmem:[%s3253_s1 + $0x1d8] sm:$0xf0]  ;;  %v1715_v56 = vor.u32 %v2127_v49, %v1712_v50 }
  0x37   :  { %v2075_v57 = vld [vmem:[%s3253_s1 + $0xc4] sm:$0xf]  ;;  %v1643_v60 = vor.u32 %v2109_v52, %v1640_v54  ;;  %v2125_v63 = vld [vmem:[%s3253_s1 + $0x254] sm:$0xf]  ;;  %v1632_v3 = vld [vmem:[%s3253_s1 + $0x1c8] sm:$0xf0] }
  0x38   :  { %850 = vmatpush.bf16.msrb.mxu3 %v1435_v45  ;;  %809 = vmatpush.bf16.msrb.mxu0 %v1679_v46  ;;  %v1512_v45 = vld [vmem:[%s3253_s1 + $0xd8] sm:$0xf0]  ;;  %v1587_v46 = vor.u32 %v2095_v32, %v1584_v37  ;;  %v2091_v62 = vld [vmem:[%s3253_s1 + $0x144] sm:$0xf]  ;;  %v1696_v12 = vld [vmem:[%s3253_s1 + $0x248] sm:$0xf0] }
  0x39   :  { %823 = vmatpush.bf16.msrb.mxu1 %v1743_v47  ;;  %v1651_v47 = vor.u32 %v2111_v38, %v1648_v39  ;;  %v1515_v55 = vor.u32 %v2077_v44, %v1512_v45  ;;  %v2107_v2 = vld [vmem:[%s3253_s1 + $0x1c4] sm:$0xf]  ;;  %v1496_v7 = vld [vmem:[%s3253_s1 + $0xb8] sm:$0xf0]  ;;  %v2121_v24 = vld [vmem:[%s3253_s1 + $0x234] sm:$0xf] }
  0x3a   :  { %837 = vmatpush.bf16.msrb.mxu2 %v1807_v51  ;;  %v1576_v51 = vld [vmem:[%s3253_s1 + $0x158] sm:$0xf0]  ;;  %v1635_v10 = vor.u32 %v2107_v2, %v1632_v3  ;;  %v2123_v11 = vld [vmem:[%s3253_s1 + $0x244] sm:$0xf]  ;;  %v1616_v28 = vld [vmem:[%s3253_s1 + $0x1a8] sm:$0xf0] }
  0x3b   :  { %v1579_v59 = vor.u32 %v2093_v48, %v1576_v51  ;;  %v1560_v13 = vld [vmem:[%s3253_s1 + $0x138] sm:$0xf0]  ;;  %v1699_v17 = vor.u32 %v2123_v11, %v1696_v12  ;;  %v2071_v18 = vld [vmem:[%s3253_s1 + $0xa4] sm:$0xf]  ;;  %v2085_v37 = vld [vmem:[%s3253_s1 + $0x114] sm:$0xf] }
  0x3c   :  { %851 = vmatpush.bf16.msrb.mxu3 %v1427_v58  ;;  %810 = vmatpush.bf16.msrb.mxu0 %v1671_v0  ;;  %v1504_v58 = vld [vmem:[%s3253_s1 + $0xc8] sm:$0xf0]  ;;  %v1704_v0 = vld [vmem:[%s3253_s1 + $0x258] sm:$0xf0]  ;;  %v2087_v23 = vld [vmem:[%s3253_s1 + $0x124] sm:$0xf] }
  0x3d   :  { %824 = vmatpush.bf16.msrb.mxu1 %v1735_v1  ;;  %v1568_v1 = vld [vmem:[%s3253_s1 + $0x148] sm:$0xf0]  ;;  %v1507_v4 = vor.u32 %v2075_v57, %v1504_v58  ;;  %v1707_v5 = vor.u32 %v2125_v63, %v1704_v0  ;;  %v1624_v15 = vld [vmem:[%s3253_s1 + $0x1b8] sm:$0xf0]  ;;  %v2103_v27 = vld [vmem:[%s3253_s1 + $0x1a4] sm:$0xf] }
  0x3e   :  { %838 = vmatpush.bf16.msrb.mxu2 %v1799_v6  ;;  %v2073_v6 = vld [vmem:[%s3253_s1 + $0xb4] sm:$0xf]  ;;  %v1571_v9 = vor.u32 %v2091_v62, %v1568_v1  ;;  %v1480_v32 = vld [vmem:[%s3253_s1 + $0x98] sm:$0xf0]  ;;  %v1619_v34 = vor.u32 %v2103_v27, %v1616_v28  ;;  %v2119_v38 = vld [vmem:[%s3253_s1 + $0x224] sm:$0xf] }
  0x3f   :  { %v1499_v16 = vor.u32 %v2073_v6, %v1496_v7  ;;  %v1680_v39 = vld [vmem:[%s3253_s1 + $0x228] sm:$0xf0]  ;;  %v2083_v48 = vld [vmem:[%s3253_s1 + $0x104] sm:$0xf]  ;;  %v2117_v52 = vld [vmem:[%s3253_s1 + $0x214] sm:$0xf] }
  0x40   :  { %852 = vmatpush.bf16.msrb.mxu3 %v1419_v14  ;;  %811 = vmatpush.bf16.msrb.mxu0 %v1663_v19  ;;  %v2105_v14 = vld [vmem:[%s3253_s1 + $0x1b4] sm:$0xf]  ;;  %v1488_v19 = vld [vmem:[%s3253_s1 + $0xa8] sm:$0xf0]  ;;  %v1683_v45 = vor.u32 %v2119_v38, %v1680_v39  ;;  %v1672_v54 = vld [vmem:[%s3253_s1 + $0x218] sm:$0xf0] }
  0x41   :  { %825 = vmatpush.bf16.msrb.mxu1 %v1727_v21  ;;  %v1627_v22 = vor.u32 %v2105_v14, %v1624_v15  ;;  %v1491_v29 = vor.u32 %v2071_v18, %v1488_v19  ;;  %v1536_v51 = vld [vmem:[%s3253_s1 + $0x108] sm:$0xf0]  ;;  %v2161_v57 = vld [vmem:[%s3253_s1 + $0x374] sm:$0xf]  ;;  %v1848_v58 = vld [vmem:[%s3253_s1 + $0x378] sm:$0xf0]  ;;  %v1675_v63 = vor.u32 %v2117_v52, %v1672_v54 }
  0x42   :  { %839 = vmatpush.bf16.msrb.mxu2 %v1791_v25  ;;  %v1688_v25 = vld [vmem:[%s3253_s1 + $0x238] sm:$0xf0]  ;;  %v1539_v0 = vor.u32 %v2083_v48, %v1536_v51  ;;  %v2115_v2 = vld [vmem:[%s3253_s1 + $0x204] sm:$0xf]  ;;  %v1664_v3 = vld [vmem:[%s3253_s1 + $0x208] sm:$0xf0] }
  0x43   :  { %812 = vmatmul.bf16.vlgmr.msrb.gmra.mxu0 %v2723_v35  ;;  %v2143_v6 = vld [vmem:[%s3253_s1 + $0x2e4] sm:$0xf]  ;;  %v1776_v7 = vld [vmem:[%s3253_s1 + $0x2e8] sm:$0xf0]  ;;  %v1768_v14 = vld [vmem:[%s3253_s1 + $0x2d8] sm:$0xf0] }
  0x44   :  { %860 = vmatpush.bf16.msra.mxu0 %v1531_v26  ;;  %826 = vmatmul.bf16.vlgmr.msrb.gmra.mxu1 %v2725_v36  ;;  %v1552_v26 = vld [vmem:[%s3253_s1 + $0x128] sm:$0xf0]  ;;  %v1779_v11 = vor.u32 %v2143_v6, %v1776_v7  ;;  %v2157_v15 = vld [vmem:[%s3253_s1 + $0x354] sm:$0xf]  ;;  %v2135_v28 = vld [vmem:[%s3253_s1 + $0x2a4] sm:$0xf] }
  0x45   :  { %874 = vmatpush.bf16.msra.mxu1 %v1595_v30  ;;  %840 = vmatmul.bf16.vlgmr.msrb.gmra.mxu2 %v2736_v40  ;;  %v1691_v30 = vor.u32 %v2121_v24, %v1688_v25  ;;  %v1555_v33 = vor.u32 %v2087_v23, %v1552_v26  ;;  %v1760_v19 = vld [vmem:[%s3253_s1 + $0x2c8] sm:$0xf0]  ;;  %v2137_v23 = vld [vmem:[%s3253_s1 + $0x2b4] sm:$0xf]  ;;  %v1816_v25 = vld [vmem:[%s3253_s1 + $0x338] sm:$0xf0] }
  0x46   :  { %888 = vmatpush.bf16.msra.mxu2 %v1659_v31  ;;  %853 = vmatpush.bf16.msrb.mxu3 %v1411_v41  ;;  %v2069_v31 = vld [vmem:[%s3253_s1 + $0x94] sm:$0xf]  ;;  %v1544_v41 = vld [vmem:[%s3253_s1 + $0x118] sm:$0xf0]  ;;  %v1888_v7 = vld [vmem:[%s3255_s3 + $0x48] sm:$0xf0] }
  0x47   :  { %v1483_v44 = vor.u32 %v2069_v31, %v1480_v32  ;;  %v1547_v49 = vor.u32 %v2085_v37, %v1544_v41  ;;  %v2153_v24 = vld [vmem:[%s3253_s1 + $0x334] sm:$0xf]  ;;  %v1808_v31 = vld [vmem:[%s3253_s1 + $0x328] sm:$0xf0]  ;;  %v1736_v37 = vld [vmem:[%s3253_s1 + $0x298] sm:$0xf0] }
  0x48   :  { %861 = vmatpush.bf16.msra.mxu0 %v1523_v42  ;;  %v2101_v42 = vld [vmem:[%s3253_s1 + $0x194] sm:$0xf]  ;;  %v1819_v27 = vor.u32 %v2153_v24, %v1816_v25  ;;  %v1800_v39 = vld [vmem:[%s3253_s1 + $0x318] sm:$0xf0] }
  0x49   :  { %875 = vmatpush.bf16.msra.mxu1 %v1587_v46  ;;  %854 = vmatmul.bf16.vlgmr.msrb.gmra.mxu3 %v2495_v53  ;;  %v2089_v53 = vld [vmem:[%s3253_s1 + $0x134] sm:$0xf]  ;;  %v2067_v46 = vld [vmem:[%s3253_s1 + $0x84] sm:$0xf]  ;;  %v1912_v54 = vld [vmem:[%s3255_s3 + $0x78] sm:$0xf0] }
  0x4a   :  { %902 = vmatpush.bf16.msra.mxu3 %v1723_v43  ;;  %889 = vmatpush.bf16.msra.mxu2 %v1651_v47  ;;  %v1563_v21 = vor.u32 %v2089_v53, %v1560_v13  ;;  %v1608_v43 = vld [vmem:[%s3253_s1 + $0x198] sm:$0xf0]  ;;  %v1472_v47 = vld [vmem:[%s3253_s1 + $0x88] sm:$0xf0]  ;;  %v1667_v53 = vor.u32 %v2115_v2, %v1664_v3  ;;  %v2141_v13 = vld [vmem:[%s3253_s1 + $0x2d4] sm:$0xf] }
  0x4b   :  { %v1611_v50 = vor.u32 %v2101_v42, %v1608_v43  ;;  %v1475_v62 = vor.u32 %v2067_v46, %v1472_v47  ;;  %v2149_v38 = vld [vmem:[%s3253_s1 + $0x314] sm:$0xf]  ;;  %v2131_v43 = vld [vmem:[%s3253_s1 + $0x284] sm:$0xf]  ;;  %v1792_v46 = vld [vmem:[%s3253_s1 + $0x308] sm:$0xf0] }
  0x4c   :  { %862 = vmatpush.bf16.msra.mxu0 %v1515_v55  ;;  %v2145_v55 = vld [vmem:[%s3253_s1 + $0x2f4] sm:$0xf]  ;;  %v1803_v42 = vor.u32 %v2149_v38, %v1800_v39  ;;  %v1886_v3 = vld [vmem:[%s3255_s3 + $0x40] sm:$0xf]  ;;  %v1864_v24 = vld [vmem:[%s3255_s3 + $0x18] sm:$0xf0] }
  0x4d   :  { %876 = vmatpush.bf16.msra.mxu1 %v1579_v59  ;;  %v2099_v59 = vld [vmem:[%s3253_s1 + $0x184] sm:$0xf]  ;;  %v2177_v51 = vld [vmem:[%s3255_s3 + $0x74] sm:$0xf] }
  0x4e   :  { %903 = vmatpush.bf16.msra.mxu3 %v1715_v56  ;;  %890 = vmatpush.bf16.msra.mxu2 %v1643_v60  ;;  %v1784_v56 = vld [vmem:[%s3253_s1 + $0x2f8] sm:$0xf0]  ;;  %v1600_v60 = vld [vmem:[%s3253_s1 + $0x188] sm:$0xf0] }
  0x4f   :  { %v1787_v1 = vor.u32 %v2145_v55, %v1784_v56  ;;  %v2176_v55 = vld [vmem:[%s3255_s3 + $0x64] sm:$0xf0]  ;;  %v2175_v56 = vld [vmem:[%s3255_s3 + $0x64] sm:$0xf] }
  0x50   :  { %863 = vmatpush.bf16.msra.mxu0 %v1507_v4  ;;  %v1851_v4 = vor.u32 %v2161_v57, %v1848_v58  ;;  %v1904_v58 = vld [vmem:[%s3255_s3 + $0x68] sm:$0xf0] }
  0x51   :  { %877 = vmatpush.bf16.msra.mxu1 %v1571_v9  ;;  %v2159_v9 = vld [vmem:[%s3253_s1 + $0x364] sm:$0xf] }
  0x52   :  { %904 = vmatpush.bf16.msra.mxu3 %v1707_v5  ;;  %891 = vmatpush.bf16.msra.mxu2 %v1635_v10  ;;  %v1603_v5 = vor.u32 %v2099_v59, %v1600_v60  ;;  %v1840_v10 = vld [vmem:[%s3253_s1 + $0x368] sm:$0xf0]  ;;  %v1907_v59 = vor.u32 %v2175_v56, %v1904_v58  ;;  %v1894_v60 = vld [vmem:[%s3255_s3 + $0x50] sm:$0xf]  ;;  %v2194_v56 = vld [vmem:[%s3255_s3 + $0xf4] sm:$0xf0] }
  0x53   :  { %v1843_v12 = vor.u32 %v2159_v9, %v1840_v10  ;;  %v1878_v10 = vld [vmem:[%s3255_s3 + $0x30] sm:$0xf] }
  0x54   :  { %864 = vmatpush.bf16.msra.mxu0 %v1499_v16  ;;  %v1832_v16 = vld [vmem:[%s3253_s1 + $0x358] sm:$0xf0] }
  0x55   :  { %878 = vmatpush.bf16.msra.mxu1 %v1563_v21  ;;  %v1835_v18 = vor.u32 %v2157_v15, %v1832_v16  ;;  %v1870_v15 = vld [vmem:[%s3255_s3 + $0x20] sm:$0xf]  ;;  %v2168_v16 = vld [vmem:[%s3255_s3 + $0x24] sm:$0xf0] }
  0x56   :  { %905 = vmatpush.bf16.msra.mxu3 %v1699_v17  ;;  %892 = vmatpush.bf16.msra.mxu2 %v1627_v22  ;;  %v1771_v17 = vor.u32 %v2141_v13, %v1768_v14  ;;  %v1880_v13 = vld [vmem:[%s3255_s3 + $0x38] sm:$0xf0] }
  0x58   :  { %865 = vmatpush.bf16.msra.mxu0 %v1491_v29  ;;  %v1744_v29 = vld [vmem:[%s3253_s1 + $0x2a8] sm:$0xf0] }
  0x59   :  { %879 = vmatpush.bf16.msra.mxu1 %v1555_v33  ;;  %v1747_v32 = vor.u32 %v2135_v28, %v1744_v29  ;;  %v2164_v28 = vld [vmem:[%s3255_s3 + $0x4] sm:$0xf0]  ;;  %v2163_v29 = vld [vmem:[%s3255_s3 + $0x4] sm:$0xf] }
  0x5a   :  { %906 = vmatpush.bf16.msra.mxu3 %v1691_v30  ;;  %893 = vmatpush.bf16.msra.mxu2 %v1619_v34  ;;  %v2151_v30 = vld [vmem:[%s3253_s1 + $0x324] sm:$0xf]  ;;  %v2133_v34 = vld [vmem:[%s3253_s1 + $0x294] sm:$0xf] }
  0x5b   :  { %v1811_v33 = vor.u32 %v2151_v30, %v1808_v31  ;;  %v1739_v41 = vor.u32 %v2133_v34, %v1736_v37  ;;  %v1856_v31 = vld [vmem:[%s3255_s3 + $0x8] sm:$0xf0] }
  0x5c   :  { %866 = vmatpush.bf16.msra.mxu0 %v1483_v44  ;;  %v1728_v44 = vld [vmem:[%s3253_s1 + $0x288] sm:$0xf0] }
  0x5d   :  { %880 = vmatpush.bf16.msra.mxu1 %v1547_v49  ;;  %v1731_v47 = vor.u32 %v2131_v43, %v1728_v44  ;;  %v1910_v49 = vld [vmem:[%s3255_s3 + $0x70] sm:$0xf] }
  0x5e   :  { %907 = vmatpush.bf16.msra.mxu3 %v1683_v45  ;;  %894 = vmatpush.bf16.msra.mxu2 %v1611_v50  ;;  %v2147_v45 = vld [vmem:[%s3253_s1 + $0x304] sm:$0xf]  ;;  %v2178_v50 = vld [vmem:[%s3255_s3 + $0x74] sm:$0xf0] }
  0x5f   :  { %v1795_v48 = vor.u32 %v2147_v45, %v1792_v46  ;;  %v1911_v52 = vor.u32 %v2178_v50, %v1910_v49 }
  0x60   :  { %867 = vmatpush.bf16.msra.mxu0 %v1475_v62  ;;  %v2174_v62 = vld [vmem:[%s3255_s3 + $0x54] sm:$0xf0] }
  0x61   :  { %881 = vmatpush.bf16.msra.mxu1 %v1539_v0  ;;  %v1895_v0 = vor.u32 %v2174_v62, %v1894_v60 }
  0x62   :  { %908 = vmatpush.bf16.msra.mxu3 %v1675_v63  ;;  %895 = vmatpush.bf16.msra.mxu2 %v1603_v5  ;;  %v2173_v63 = vld [vmem:[%s3255_s3 + $0x54] sm:$0xf]  ;;  %v2171_v5 = vld [vmem:[%s3255_s3 + $0x44] sm:$0xf] }
  0x63   :  { %868 = vmatmul.bf16.vlgmr.msra.gmra.mxu0 %v2540_v8  ;;  %v2139_v8 = vld [vmem:[%s3253_s1 + $0x2c4] sm:$0xf]  ;;  %v1891_v9 = vor.u32 %v2171_v5, %v1888_v7 }
  0x64   :  { %916 = vmatpush.bf16.msrb.mxu0 %v1787_v1  ;;  %882 = vmatmul.bf16.vlgmr.msra.gmra.mxu1 %v2512_v61  ;;  %v2155_v61 = vld [vmem:[%s3253_s1 + $0x344] sm:$0xf]  ;;  %v1763_v21 = vor.u32 %v2139_v8, %v1760_v19  ;;  %v1896_v1 = vld [vmem:[%s3255_s3 + $0x58] sm:$0xf0]  ;;  %v1872_v8 = vld [vmem:[%s3255_s3 + $0x28] sm:$0xf0] }
  0x65   :  { %930 = vmatpush.bf16.msrb.mxu1 %v1851_v4  ;;  %896 = vmatmul.bf16.vlgmr.msra.gmra.mxu2 %v2567_v20  ;;  %v1824_v20 = vld [vmem:[%s3253_s1 + $0x348] sm:$0xf0]  ;;  %v1899_v2 = vor.u32 %v2173_v63, %v1896_v1  ;;  %v2172_v4 = vld [vmem:[%s3255_s3 + $0x44] sm:$0xf0]  ;;  %v2191_v5 = vld [vmem:[%s3255_s3 + $0xe4] sm:$0xf] }
  0x66   :  { %909 = vmatpush.bf16.msra.mxu3 %v1667_v53  ;;  %v1827_v22 = vor.u32 %v2155_v61, %v1824_v20  ;;  %1148 = vmatpush.bf16.msrb.mxu2 %v1911_v52  ;;  %v1887_v6 = vor.u32 %v2172_v4, %v1886_v3  ;;  %v2170_v53 = vld [vmem:[%s3255_s3 + $0x34] sm:$0xf0]  ;;  %v1862_v20 = vld [vmem:[%s3255_s3 + $0x10] sm:$0xf]  ;;  %v1966_v3 = vld [vmem:[%s3255_s3 + $0xe0] sm:$0xf] }
  0x67   :  { %v2192_v4 = vld [vmem:[%s3255_s3 + $0xe4] sm:$0xf0] }
  0x68   :  { %917 = vmatpush.bf16.msrb.mxu0 %v1779_v11  ;;  %v2169_v11 = vld [vmem:[%s3255_s3 + $0x34] sm:$0xf]  ;;  %v1967_v7 = vor.u32 %v2192_v4, %v1966_v3 }
  0x69   :  { %931 = vmatpush.bf16.msrb.mxu1 %v1843_v12  ;;  %910 = vmatmul.bf16.vlgmr.msra.gmra.mxu3 %v2723_v35  ;;  %v1752_v35 = vld [vmem:[%s3253_s1 + $0x2b8] sm:$0xf0]  ;;  %v1879_v12 = vor.u32 %v2170_v53, %v1878_v10  ;;  %v1883_v14 = vor.u32 %v2169_v11, %v1880_v13  ;;  %v1958_v11 = vld [vmem:[%s3255_s3 + $0xd0] sm:$0xf]  ;;  %v2189_v13 = vld [vmem:[%s3255_s3 + $0xd4] sm:$0xf] }
  0x6a   :  { %v1755_v26 = vor.u32 %v2137_v23, %v1752_v35 }
  0x6c   :  { %918 = vmatpush.bf16.msrb.mxu0 %v1771_v17  ;;  %v2167_v17 = vld [vmem:[%s3255_s3 + $0x24] sm:$0xf] }
  0x6d   :  { %932 = vmatpush.bf16.msrb.mxu1 %v1835_v18  ;;  %v1871_v18 = vor.u32 %v2168_v16, %v1870_v15  ;;  %v1875_v19 = vor.u32 %v2167_v17, %v1872_v8  ;;  %v1960_v15 = vld [vmem:[%s3255_s3 + $0xd8] sm:$0xf0]  ;;  %v2188_v8 = vld [vmem:[%s3255_s3 + $0xc4] sm:$0xf0] }
  0x70   :  { %919 = vmatpush.bf16.msrb.mxu0 %v1763_v21  ;;  %v2166_v21 = vld [vmem:[%s3255_s3 + $0x14] sm:$0xf0] }
  0x71   :  { %933 = vmatpush.bf16.msrb.mxu1 %v1827_v22  ;;  %v2165_v22 = vld [vmem:[%s3255_s3 + $0x14] sm:$0xf]  ;;  %v1863_v35 = vor.u32 %v2166_v21, %v1862_v20  ;;  %v2187_v20 = vld [vmem:[%s3255_s3 + $0xc4] sm:$0xf]  ;;  %v1952_v21 = vld [vmem:[%s3255_s3 + $0xc8] sm:$0xf0] }
  0x72   :  { %v1867_v25 = vor.u32 %v2165_v22, %v1864_v24  ;;  %v2186_v24 = vld [vmem:[%s3255_s3 + $0xb4] sm:$0xf0] }
  0x74   :  { %920 = vmatpush.bf16.msrb.mxu0 %v1755_v26  ;;  %v3081_v26 = vld [vmem:[%s3256_s2] sm:$0x3] }
  0x75   :  { %934 = vmatpush.bf16.msrb.mxu1 %v1819_v27  ;;  %v1854_v27 = vld [vmem:[%s3255_s3] sm:$0xf] }
  0x76   :  { %v1855_v30 = vor.u32 %v2164_v28, %v1854_v27  ;;  %v1944_v28 = vld [vmem:[%s3255_s3 + $0xb8] sm:$0xf0] }
  0x78   :  { %921 = vmatpush.bf16.msrb.mxu0 %v1747_v32  ;;  %v148_v32 = vperm.slane %v3081_v26, 0 }
  0x79   :  { %935 = vmatpush.bf16.msrb.mxu1 %v1811_v33  ;;  %v1859_v33 = vor.u32 %v2163_v29, %v1856_v31  ;;  %v2184_v31 = vld [vmem:[%s3255_s3 + $0xa4] sm:$0xf0] }
  0x7c   :  { %922 = vmatpush.bf16.msrb.mxu0 %v1739_v41 }
  0x7d   :  { %936 = vmatpush.bf16.msrb.mxu1 %v1803_v42 }
  0x80   :  { %923 = vmatpush.bf16.msrb.mxu0 %v1731_v47 }
  0x81   :  { %937 = vmatpush.bf16.msrb.mxu1 %v1795_v48 }
  0x83   :  { %924 = vmatmul.bf16.vlgmr.msrb.gmra.mxu0 %v2725_v36  ;;  %v1915_v36 = vor.u32 %v2177_v51, %v1912_v54 }
  0x84   :  { %938 = vmatmul.bf16.vlgmr.msrb.gmra.mxu1 %v2736_v40  ;;  %v1902_v40 = vld [vmem:[%s3255_s3 + $0x60] sm:$0xf] }
  0x85   :  { %1176 = vmatpush.bf16.msra.mxu0 %v1915_v36  ;;  %v1903_v57 = vor.u32 %v2176_v55, %v1902_v40  ;;  %v1974_v55 = vld [vmem:[%s3255_s3 + $0xf0] sm:$0xf] }
  0x86   :  { %v1975_v58 = vor.u32 %v2194_v56, %v1974_v55 }
  0x87   :  { %1149 = vmatpush.bf16.msrb.mxu2 %v1903_v57  ;;  %v2193_v57 = vld [vmem:[%s3255_s3 + $0xf4] sm:$0xf] }
  0x88   :  { %1162 = vmatpush.bf16.msrb.mxu3 %v1975_v58 }
  0x89   :  { %1177 = vmatpush.bf16.msra.mxu0 %v1907_v59  ;;  %v1976_v59 = vld [vmem:[%s3255_s3 + $0xf8] sm:$0xf0] }
  0x8a   :  { %v1979_v63 = vor.u32 %v2193_v57, %v1976_v59 }
  0x8b   :  { %1150 = vmatpush.bf16.msrb.mxu2 %v1895_v0 }
  0x8c   :  { %1190 = vmatpush.bf16.msra.mxu1 %v1979_v63  ;;  %1163 = vmatpush.bf16.msrb.mxu3 %v1967_v7 }
  0x8d   :  { %1178 = vmatpush.bf16.msra.mxu0 %v1899_v2 }
  0x8f   :  { %1151 = vmatpush.bf16.msrb.mxu2 %v1887_v6 }
  0x91   :  { %1179 = vmatpush.bf16.msra.mxu0 %v1891_v9  ;;  %v1968_v9 = vld [vmem:[%s3255_s3 + $0xe8] sm:$0xf0] }
  0x92   :  { %v1971_v53 = vor.u32 %v2191_v5, %v1968_v9 }
  0x93   :  { %1152 = vmatpush.bf16.msrb.mxu2 %v1879_v12  ;;  %v2190_v12 = vld [vmem:[%s3255_s3 + $0xd4] sm:$0xf0] }
  0x94   :  { %1191 = vmatpush.bf16.msra.mxu1 %v1971_v53 }
  0x95   :  { %1180 = vmatpush.bf16.msra.mxu0 %v1883_v14  ;;  %v1959_v14 = vor.u32 %v2190_v12, %v1958_v11 }
  0x97   :  { %1153 = vmatpush.bf16.msrb.mxu2 %v1871_v18  ;;  %v1950_v18 = vld [vmem:[%s3255_s3 + $0xc0] sm:$0xf]  ;;  %1164 = vmatpush.bf16.msrb.mxu3 %v1959_v14 }
  0x98   :  { %v1951_v22 = vor.u32 %v2188_v8, %v1950_v18  ;;  %v2210_v18 = vld [vmem:[%s3257_s5 + $0x78] sm:$0xff] }
  0x99   :  { %1181 = vmatpush.bf16.msra.mxu0 %v1875_v19  ;;  %v1963_v19 = vor.u32 %v2189_v13, %v1960_v15  ;;  %v2202_v8 = vld [vmem:[%s3257_s5 + $0x38] sm:$0xff] }
  0x9b   :  { %1154 = vmatpush.bf16.msrb.mxu2 %v1863_v35  ;;  %1192 = vmatpush.bf16.msra.mxu1 %v1963_v19  ;;  %v1942_v35 = vld [vmem:[%s3255_s3 + $0xb0] sm:$0xf] }
  0x9c   :  { %1165 = vmatpush.bf16.msrb.mxu3 %v1951_v22  ;;  %v1943_v27 = vor.u32 %v2186_v24, %v1942_v35  ;;  %v2209_v19 = vld [vmem:[%s3257_s5 + $0x70] sm:$0xff]  ;;  %v2207_v22 = vld [vmem:[%s3257_s5 + $0x60] sm:$0xff] }
  0x9d   :  { %1182 = vmatpush.bf16.msra.mxu0 %v1867_v25  ;;  %v2185_v25 = vld [vmem:[%s3255_s3 + $0xb4] sm:$0xf]  ;;  %v2199_v35 = vld [vmem:[%s3257_s5 + $0x20] sm:$0xff] }
  0x9e   :  { %v1947_v29 = vor.u32 %v2185_v25, %v1944_v28  ;;  %v2205_v24 = vld [vmem:[%s3257_s5 + $0x50] sm:$0xff]  ;;  %v2198_v25 = vld [vmem:[%s3257_s5 + $0x18] sm:$0xff] }
  0x9f   :  { %1155 = vmatpush.bf16.msrb.mxu2 %v1855_v30  ;;  %v1934_v30 = vld [vmem:[%s3255_s3 + $0xa0] sm:$0xf]  ;;  %v2197_v28 = vld [vmem:[%s3257_s5 + $0x10] sm:$0xff] }
  0xa0   :  { %v757_v61 = vpop.f32.mrf.mxu0  ;;  %1166 = vmatpush.bf16.msrb.mxu3 %v1943_v27  ;;  %v2204_v27 = vld [vmem:[%s3257_s5 + $0x48] sm:$0xff] }
  0xa1   :  { %1183 = vmatpush.bf16.msra.mxu0 %v1859_v33  ;;  %v758_v37 = vadd.f32 %v757_v61, %v148_v32  ;;  %v1935_v33 = vor.u32 %v2184_v31, %v1934_v30  ;;  %v2196_v30 = vld [vmem:[%s3257_s5 + $0x8] sm:$0xff]  ;;  %v2195_v31 = vld [vmem:[%s3257_s5] sm:$0xff] }
  0xa3   :  { %v771_v23 = vpop.f32.mrf.mxu1  ;;  %1342 = vmatpush.bf16.msra.mxu2 %v2202_v8 }
  0xa4   :  { %v772_v41 = vadd.f32 %v771_v23, %v758_v37  ;;  %v1955_v23 = vor.u32 %v2187_v20, %v1952_v21  ;;  %1167 = vmatpush.bf16.msrb.mxu3 %v1935_v33  ;;  %v2208_v20 = vld [vmem:[%s3257_s5 + $0x68] sm:$0xff]  ;;  %v982_v33 = vld [vmem:[%s3258_s4] sm:$0x3] }
  0xa5   :  { %v2200_v21 = vld [vmem:[%s3257_s5 + $0x28] sm:$0xff] }
  0xa6   :  { %1193 = vmatpush.bf16.msra.mxu1 %v1955_v23  ;;  %v2206_v23 = vld [vmem:[%s3257_s5 + $0x58] sm:$0xff] }
  0xa8   :  { %v785_v34 = vpop.f32.mrf.mxu2  ;;  %v759_v38 = vpop.f32.mrf.mxu0 }
  0xa9   :  { %v760_v43 = vadd.f32 %v759_v38, %v148_v32  ;;  %v786_v45 = vadd.f32 %v785_v34, %v772_v41  ;;  %v2183_v32 = vld [vmem:[%s3255_s3 + $0xa4] sm:$0xf]  ;;  %v1936_v34 = vld [vmem:[%s3255_s3 + $0xa8] sm:$0xf0]  ;;  %v2182_v41 = vld [vmem:[%s3255_s3 + $0x94] sm:$0xf0] }
  0xaa   :  { %v799_v42 = vpop.f32.mrf.mxu3  ;;  %1194 = vmatpush.bf16.msra.mxu1 %v1947_v29  ;;  %v1939_v38 = vor.u32 %v2183_v32, %v1936_v34  ;;  %v2203_v29 = vld [vmem:[%s3257_s5 + $0x40] sm:$0xff] }
  0xab   :  { %v773_v39 = vpop.f32.mrf.mxu1  ;;  %v800_v49 = vadd.f32 %v799_v42, %v786_v45  ;;  %v2181_v42 = vld [vmem:[%s3255_s3 + $0x94] sm:$0xf] }
  0xac   :  { %v774_v46 = vadd.f32 %v773_v39, %v760_v43  ;;  %v1926_v39 = vld [vmem:[%s3255_s3 + $0x90] sm:$0xf] }
  0xad   :  { %v1927_v43 = vor.u32 %v2182_v41, %v1926_v39 }
  0xae   :  { %1195 = vmatpush.bf16.msra.mxu1 %v1939_v38  ;;  %v985_v38 = vperm.slane %v982_v33, 1 }
  0xaf   :  { %1168 = vmatpush.bf16.msrb.mxu3 %v1927_v43  ;;  %v984_v43 = vperm.slane %v982_v33, 0 }
  0xb0   :  { %v787_v44 = vpop.f32.mrf.mxu2 }
  0xb1   :  { %v788_v50 = vadd.f32 %v787_v44, %v774_v46  ;;  %v1928_v44 = vld [vmem:[%s3255_s3 + $0x98] sm:$0xf0]  ;;  %v1918_v46 = vld [vmem:[%s3255_s3 + $0x80] sm:$0xf] }
  0xb2   :  { %v801_v51 = vpop.f32.mrf.mxu3  ;;  %v1931_v45 = vor.u32 %v2181_v42, %v1928_v44 }
  0xb3   :  { %v802_v36 = vadd.f32 %v801_v51, %v788_v50  ;;  %v1920_v50 = vld [vmem:[%s3255_s3 + $0x88] sm:$0xf0] }
  0xb4   :  { %1196 = vmatpush.bf16.msra.mxu1 %v1931_v45 }
  0xc0   :  { %v813_v47 = vpop.f32.mrf.mxu0 }
  0xc1   :  { %v827_v48 = vpop.f32.mrf.mxu1  ;;  %v814_v52 = vadd.f32 %v813_v47, %v800_v49  ;;  %v2180_v47 = vld [vmem:[%s3255_s3 + $0x84] sm:$0xf0] }
  0xc2   :  { %v1919_v49 = vor.u32 %v2180_v47, %v1918_v46 }
  0xc3   :  { %v828_v60 = vadd.f32 %v827_v48, %v814_v52  ;;  %v2179_v48 = vld [vmem:[%s3255_s3 + $0x84] sm:$0xf] }
  0xc4   :  { %v1923_v52 = vor.u32 %v2179_v48, %v1920_v50  ;;  %1169 = vmatpush.bf16.msrb.mxu3 %v1919_v49 }
  0xc6   :  { %1197 = vmatpush.bf16.msra.mxu1 %v1923_v52 }
  0xc8   :  { %v841_v54 = vpop.f32.mrf.mxu2  ;;  %v815_v40 = vpop.f32.mrf.mxu0  ;;  %1356 = vmatpush.bf16.msra.mxu3 %v2210_v18 }
  0xc9   :  { %v816_v62 = vadd.f32 %v815_v40, %v802_v36  ;;  %v829_v0 = vpop.f32.mrf.mxu1  ;;  %v842_v1 = vadd.f32 %v841_v54, %v828_v60  ;;  %v149_v54 = vperm.slane %v3081_v26, 1 }
  0xcb   :  { %v830_v2 = vadd.f32 %v829_v0, %v816_v62  ;;  %v944_v16 = vmax.f32 %v842_v1, 0.0 }
  0xcc   :  { %v855_v37 = vpop.f32.mrf.mxu3  ;;  %1357 = vmatpush.bf16.msra.mxu3 %v2209_v19 }
  0xcd   :  { %v856_v55 = vadd.f32 %v855_v37, %v149_v54 }
  0xd0   :  { %v843_v6 = vpop.f32.mrf.mxu2  ;;  %1358 = vmatpush.bf16.msra.mxu3 %v2208_v20 }
  0xd1   :  { %v844_v10 = vadd.f32 %v843_v6, %v830_v2 }
  0xd3   :  { %v946_v17 = vmax.f32 %v844_v10, 0.0 }
  0xd4   :  { %v857_v40 = vpop.f32.mrf.mxu3  ;;  %1359 = vmatpush.bf16.msra.mxu3 %v2207_v22 }
  0xd5   :  { %v948_v61 = vpack.c.bf16 %v946_v17, %v944_v16  ;;  %v858_v57 = vadd.f32 %v857_v40, %v149_v54 }
  0xd7   :  { %1156 = vmatmul.bf16.vlgmr.msrb.gmra.mxu2 %v948_v61  ;;  %1184 = vmatmul.bf16.vlgmr.msra.gmra.mxu0 %v948_v61  ;;  %v2201_v61 = vld [vmem:[%s3257_s5 + $0x30] sm:$0xff] }
  0xd8   :  { %1343 = vmatpush.bf16.msra.mxu2 %v2201_v61  ;;  %1360 = vmatpush.bf16.msra.mxu3 %v2206_v23 }
  0xdc   :  { %1344 = vmatpush.bf16.msra.mxu2 %v2200_v21  ;;  %1361 = vmatpush.bf16.msra.mxu3 %v2205_v24 }
  0xe0   :  { %v869_v51 = vpop.f32.mrf.mxu0  ;;  %1345 = vmatpush.bf16.msra.mxu2 %v2199_v35  ;;  %1362 = vmatpush.bf16.msra.mxu3 %v2204_v27 }
  0xe1   :  { %v883_v36 = vpop.f32.mrf.mxu1  ;;  %v870_v58 = vadd.f32 %v869_v51, %v856_v55 }
  0xe3   :  { %v884_v63 = vadd.f32 %v883_v36, %v870_v58 }
  0xe4   :  { %1346 = vmatpush.bf16.msra.mxu2 %v2198_v25  ;;  %1363 = vmatpush.bf16.msra.mxu3 %v2203_v29 }
  0xe8   :  { %v897_v56 = vpop.f32.mrf.mxu2  ;;  %v871_v59 = vpop.f32.mrf.mxu0  ;;  %1347 = vmatpush.bf16.msra.mxu2 %v2197_v28 }
  0xe9   :  { %v885_v60 = vpop.f32.mrf.mxu1  ;;  %v872_v0 = vadd.f32 %v871_v59, %v858_v57  ;;  %v898_v1 = vadd.f32 %v897_v56, %v884_v63  ;;  %v2211_v59 = vld [vmem:[%s3259_s6] ss:$0 sm:$0xff] }
  0xeb   :  { %v886_v2 = vadd.f32 %v885_v60, %v872_v0 }
  0xec   :  { %v911_v62 = vpop.f32.mrf.mxu3  ;;  %1348 = vmatpush.bf16.msra.mxu2 %v2196_v30 }
  0xed   :  { %v912_v6 = vadd.f32 %v911_v62, %v898_v1 }
  0xf0   :  { %v899_v3 = vpop.f32.mrf.mxu2  ;;  %1349 = vmatpush.bf16.msra.mxu2 %v2195_v31 }
  0xf1   :  { %v900_v26 = vadd.f32 %v899_v3, %v886_v2 }
  0xf4   :  { %v913_v7 = vpop.f32.mrf.mxu3 }
  0xf5   :  { %v914_v10 = vadd.f32 %v913_v7, %v900_v26 }
 0x100   :  { %v925_v4 = vpop.f32.mrf.mxu0 }
 0x101   :  { %v939_v5 = vpop.f32.mrf.mxu1  ;;  %v926_v9 = vadd.f32 %v925_v4, %v912_v6 }
 0x103   :  { %v940_v11 = vadd.f32 %v939_v5, %v926_v9 }
 0x105   :  { %v945_v15 = vmax.f32 %v940_v11, 0.0 }
 0x108   :  { %v927_v53 = vpop.f32.mrf.mxu0 }
 0x109   :  { %v928_v12 = vadd.f32 %v927_v53, %v914_v10  ;;  %v941_v13 = vpop.f32.mrf.mxu1 }
 0x10b   :  { %v942_v14 = vadd.f32 %v941_v13, %v928_v12 }
 0x10d   :  { %v947_v16 = vmax.f32 %v942_v14, 0.0 }
 0x10f   :  { %v949_v17 = vpack.c.bf16 %v947_v16, %v945_v15 }
 0x111   :  { %1170 = vmatmul.bf16.vlgmr.msrb.gmra.mxu3 %v949_v17  ;;  %1198 = vmatmul.bf16.vlgmr.msra.gmra.mxu1 %v949_v17 }
 0x154   :  { %v1185_v32 = vpop.f32.mrf.mxu0 }
 0x155   :  { %v1186_v41 = vadd.f32 %v1185_v32, %v985_v38 }
 0x15a   :  { %v1157_v34 = vpop.f32.mrf.mxu2 }
 0x15b   :  { %v1158_v49 = vadd.f32 %v1157_v34, %v984_v43 }
 0x15c   :  { %v1187_v39 = vpop.f32.mrf.mxu0 }
 0x15d   :  { %v1188_v44 = vadd.f32 %v1187_v39, %v985_v38 }
 0x162   :  { %v1159_v48 = vpop.f32.mrf.mxu2 }
 0x163   :  { %v1160_v52 = vadd.f32 %v1159_v48, %v984_v43 }
 0x18e   :  { %v1199_v37 = vpop.f32.mrf.mxu1 }
 0x18f   :  { %v1200_v45 = vadd.f32 %v1199_v37, %v1186_v41 }
 0x191   :  { %v1205_v50 = vmax.f32 %v1200_v45, 0.0 }
 0x194   :  { %v1171_v42 = vpop.f32.mrf.mxu3 }
 0x195   :  { %v1172_v54 = vadd.f32 %v1171_v42, %v1158_v49 }
 0x196   :  { %v1201_v46 = vpop.f32.mrf.mxu1 }
 0x197   :  { %v1202_v47 = vadd.f32 %v1201_v46, %v1188_v44  ;;  %v1204_v56 = vmax.f32 %v1172_v54, 0.0 }
 0x199   :  { %v1207_v51 = vmax.f32 %v1202_v47, 0.0 }
 0x19b   :  { %v1209_v36 = vpack.c.bf16 %v1207_v51, %v1205_v50 }
 0x19c   :  { %v1173_v40 = vpop.f32.mrf.mxu3 }
 0x19d   :  { %v1174_v55 = vadd.f32 %v1173_v40, %v1160_v52  ;;  %1364 = vmatmul.bf16.vlgmr.msra.gmra.mxu3 %v1209_v36 }
 0x19f   :  { %v1206_v57 = vmax.f32 %v1174_v55, 0.0 }
 0x1a1   :  { %v1208_v58 = vpack.c.bf16 %v1206_v57, %v1204_v56 }
 0x1a3   :  { %1350 = vmatmul.bf16.vlgmr.msra.gmra.mxu2 %v1208_v58 }
 0x220   :  { %v1365_v60 = vpop.f32.mrf.mxu3 }
 0x226   :  { %v1351_v62 = vpop.f32.mrf.mxu2 }
 0x227   :  { %v1352_v63 = vadd.f32 %v2211_v59, %v1351_v62 }
 0x228   :  { %v1367_v3 = vpop.f32.mrf.mxu3 }
 0x229   :  { %v1366_v0 = vadd.f32 %v1365_v60, %v1352_v63 }
 0x22b   :  { %1370 = vst [vmem:[%s3260_s7] sm:$0xff] %v1366_v0 }
 0x22e   :  { %v1353_v1 = vpop.f32.mrf.mxu2 }
 0x22f   :  { %v1354_v2 = vadd.f32 %v2211_v59, %v1353_v1 }
 0x231   :  { %v1368_v4 = vadd.f32 %v1367_v3, %v1354_v2 }
 0x233   :  { %1371 = vst [vmem:[%s3260_s7 + $0x8] sm:$0xff] %v1368_v4 }

</bundles_post_ra>
